<compile_context>
chip_gen: v7x
topology: tpu7x:2x2x1
jax: 0.10.0
libtpu: 0.0.40
codegen_flags: <defaults>
</compile_context>

<pallas_src>
import functools

import jax
import jax.numpy as jnp
from jax.experimental import pallas as pl
from jax.experimental.pallas import tpu as pltpu


def _expr_loss_kernel(x_ref, y_ref, w_ref, out_ref, num_acc, den_acc, *, n):
    i = pl.program_id(0)

    @pl.when(i == 0)
    def _init():
        num_acc[...] = jnp.zeros_like(num_acc)
        den_acc[...] = jnp.zeros_like(den_acc)

    x = x_ref[...].astype(jnp.float32)          # (tb, c) logits tile
    y = y_ref[...]                              # (tb, 1) int32 class ids
    w = w_ref[...].astype(jnp.float32)          # (1, c)  class weights

    tb, c = x.shape

    # Numerically stable row-wise log-sum-exp.
    m = jnp.max(x, axis=1, keepdims=True)                                # (tb, 1)
    lse = m + jnp.log(jnp.sum(jnp.exp(x - m), axis=1, keepdims=True))    # (tb, 1)

    # Gather x[i, y_i] and w[y_i] with a one-hot mask (no gathers on TPU vregs).
    class_ids = jax.lax.broadcasted_iota(jnp.int32, (tb, c), 1)
    onehot = class_ids == y                                              # (tb, c)
    x_y = jnp.sum(jnp.where(onehot, x, 0.0), axis=1, keepdims=True)      # (tb, 1)
    w_y = jnp.sum(jnp.where(onehot, w, 0.0), axis=1, keepdims=True)      # (tb, 1)

    # Mask rows of the (possibly ragged) last tile; padded rows contribute 0.
    row_ids = i * tb + jax.lax.broadcasted_iota(jnp.int32, (tb, 1), 0)
    valid = row_ids < n

    num_acc[...] += jnp.where(valid, w_y * (lse - x_y), 0.0)
    den_acc[...] += jnp.where(valid, w_y, 0.0)

    @pl.when(i == pl.num_programs(0) - 1)
    def _finalize():
        num = jnp.sum(num_acc[...], axis=0, keepdims=True)               # (1, 1)
        den = jnp.sum(den_acc[...], axis=0, keepdims=True)               # (1, 1)
        out_ref[...] = num / den


def _round_up(a, b):
    return (a + b - 1) // b * b


def expr_loss(x, y, weight):
    """JAX/Pallas equivalent of ExprLoss.forward(x, y):
    CrossEntropyLoss(weight=weight)(x, y) with integer class targets,
    default 'mean' reduction (i.e. sum(w[y]*nll) / sum(w[y]))."""
    if x.ndim > 2:
        # (N, C, d1, ...) -> (N*d1*..., C), matching torch's K-dim CE semantics.
        c = x.shape[1]
        x2d = jnp.moveaxis(x, 1, -1).reshape(-1, c)
        y1d = y.reshape(-1)
    else:
        x2d = x
        y1d = y

    n, c = x2d.shape
    y2d = y1d.astype(jnp.int32).reshape(n, 1)
    w2d = jnp.asarray(weight, jnp.float32).reshape(1, c)

    # Tile rows: multiple of 8 sublanes; cap the per-tile bytes so pipelined
    # double-buffering stays well inside the scoped-VMEM default on all chips.
    itemsize = jnp.dtype(x2d.dtype).itemsize
    rows_budget = max(8, ((2 << 20) // max(c * itemsize, 1)) // 8 * 8)
    tb = max(8, min(512, _round_up(n, 8), rows_budget))
    grid = (pl.cdiv(n, tb),)

    kernel = functools.partial(_expr_loss_kernel, n=n)

    cost = pl.CostEstimate(
        flops=8 * n * c,
        transcendentals=n * c + n,
        bytes_accessed=x2d.size * itemsize + y2d.size * 4 + w2d.size * 4 + 4,
    )

    out = pl.pallas_call(
        kernel,
        out_shape=jax.ShapeDtypeStruct((1, 1), jnp.float32),
        grid_spec=pltpu.PrefetchScalarGridSpec(
            num_scalar_prefetch=0,
            grid=grid,
            in_specs=[
                pl.BlockSpec((tb, c), lambda i: (i, 0)),   # logits tile
                pl.BlockSpec((tb, 1), lambda i: (i, 0)),   # targets tile
                pl.BlockSpec((1, c), lambda i: (0, 0)),    # class weights (resident)
            ],
            out_specs=pl.BlockSpec((1, 1), lambda i: (0, 0)),
            scratch_shapes=[
                pltpu.VMEM((tb, 1), jnp.float32),          # per-row weighted NLL partials
                pltpu.VMEM((tb, 1), jnp.float32),          # per-row weight partials
            ],
        ),
        compiler_params=pltpu.CompilerParams(
            dimension_semantics=("arbitrary",),            # streaming reduction axis
        ),
        cost_estimate=cost,
    )(x2d, y2d, w2d)
    return out[0, 0]


def _expr_loss_reference(x, y, weight):
    """Pure-JAX reference mirroring torch.nn.CrossEntropyLoss(weight=w)(x, y)."""
    if x.ndim > 2:
        c = x.shape[1]
        x = jnp.moveaxis(x, 1, -1).reshape(-1, c)
        y = y.reshape(-1)
    x = x.astype(jnp.float32)
    w = jnp.asarray(weight, jnp.float32)
    logp = jax.nn.log_softmax(x, axis=-1)
    nll = -logp[jnp.arange(x.shape[0]), y]
    wy = w[y]
    return jnp.sum(wy * nll) / jnp.sum(wy)


if __name__ == "__main__":
    key = jax.random.PRNGKey(0)
    kx, ky = jax.random.split(key)

    # ExprLoss inputs: logits (batch, num_expressions), integer labels (batch,)
    B, C = 32, 8
    x = jax.random.normal(kx, (B, C), dtype=jnp.float32)
    y = jax.random.randint(ky, (B,), 0, C, dtype=jnp.int32)
    weight = jnp.linspace(0.5, 1.5, C, dtype=jnp.float32)   # per-class CE weights

    loss = jax.block_until_ready(expr_loss(x, y, weight))
    ref = jax.block_until_ready(_expr_loss_reference(x, y, weight))
    assert jnp.allclose(loss, ref, rtol=1e-5, atol=1e-5), (loss, ref)

    print("KERNEL_OK")
</pallas_src>

<mosaic_0001>
module attributes {stable_mosaic.version = 11 : i64} {
  func.func @_expr_loss_kernel(%arg0: i32, %arg1: memref<32x8xf32, #tpu.memory_space<vmem>>, %arg2: memref<32x1xi32, #tpu.memory_space<vmem>>, %arg3: memref<1x8xf32, #tpu.memory_space<vmem>>, %arg4: memref<1x1xf32, #tpu.memory_space<vmem>>, %arg5: memref<32x1xf32, #tpu.memory_space<vmem>>, %arg6: memref<32x1xf32, #tpu.memory_space<vmem>>) attributes {dimension_semantics = [#tpu.dimension_semantics<arbitrary>], iteration_bounds = array<i64: 1>, scalar_prefetch = 0 : i64, scratch_operands = 2 : i64, tpu.core_type = #tpu.core_type<tc>, window_params = [{transform_indices = @transform_0, window_bounds = array<i64: 32, 8>}, {transform_indices = @transform_1, window_bounds = array<i64: 32, 1>}, {pipeline_mode = #tpu.pipeline_mode<synchronous>, transform_indices = @transform_2, window_bounds = array<i64: 1, 8>}, {pipeline_mode = #tpu.pipeline_mode<synchronous>, transform_indices = @transform_3, window_bounds = array<i64: 1, 1>}]} {
    %c0_i32 = arith.constant 0 : i32
    %0 = arith.cmpi eq, %arg0, %c0_i32 : i32
    %1 = arith.extui %0 : i1 to i32
    %c0_i32_0 = arith.constant 0 : i32
    %2 = arith.cmpi ne, %1, %c0_i32_0 : i32
    scf.if %2 {
      %cst_24 = arith.constant 0.000000e+00 : f32
      %49 = vector.broadcast %cst_24 : f32 to vector<32x1xf32>
      %c0_25 = arith.constant 0 : index
      %c0_26 = arith.constant 0 : index
      %50 = vector.load %arg5[%c0_25, %c0_26] : memref<32x1xf32, #tpu.memory_space<vmem>>, vector<32x1xf32>
      tpu.vector_store %arg5[%c0_25, %c0_26], %49 {strides = array<i32>} : memref<32x1xf32, #tpu.memory_space<vmem>>, vector<32x1xf32>,
      %cst_27 = arith.constant 0.000000e+00 : f32
      %51 = vector.broadcast %cst_27 : f32 to vector<32x1xf32>
      %c0_28 = arith.constant 0 : index
      %c0_29 = arith.constant 0 : index
      %52 = vector.load %arg6[%c0_28, %c0_29] : memref<32x1xf32, #tpu.memory_space<vmem>>, vector<32x1xf32>
      tpu.vector_store %arg6[%c0_28, %c0_29], %51 {strides = array<i32>} : memref<32x1xf32, #tpu.memory_space<vmem>>, vector<32x1xf32>,
    } else {
    }
    %c0 = arith.constant 0 : index
    %c0_1 = arith.constant 0 : index
    %3 = vector.load %arg1[%c0, %c0_1] : memref<32x8xf32, #tpu.memory_space<vmem>>, vector<32x8xf32>
    %c0_2 = arith.constant 0 : index
    %c0_3 = arith.constant 0 : index
    %4 = vector.load %arg2[%c0_2, %c0_3] : memref<32x1xi32, #tpu.memory_space<vmem>>, vector<32x1xi32>
    %c0_4 = arith.constant 0 : index
    %c0_5 = arith.constant 0 : index
    %5 = vector.load %arg3[%c0_4, %c0_5] : memref<1x8xf32, #tpu.memory_space<vmem>>, vector<1x8xf32>
    %cst = arith.constant dense<0xFF800000> : vector<32xf32>
    %6 = vector.multi_reduction <maximumf>, %3, %cst [1] : vector<32x8xf32> to vector<32xf32>
    %7 = vector.shape_cast %6 : vector<32xf32> to vector<32x1xf32>
    %8 = vector.broadcast %7 : vector<32x1xf32> to vector<32x8xf32>
    %9 = arith.subf %3, %8 : vector<32x8xf32>
    %10 = math.exp %9 : vector<32x8xf32>
    %cst_6 = arith.constant dense<0.000000e+00> : vector<32xf32>
    %11 = vector.multi_reduction <add>, %10, %cst_6 [1] : vector<32x8xf32> to vector<32xf32>
    %12 = vector.shape_cast %11 : vector<32xf32> to vector<32x1xf32>
    %13 = math.log %12 : vector<32x1xf32>
    %14 = arith.addf %7, %13 : vector<32x1xf32>
    %15 = tpu.iota {dimensions = array<i32: 1>} : vector<32x8xi32>
    %16 = vector.broadcast %4 : vector<32x1xi32> to vector<32x8xi32>
    %17 = arith.cmpi eq, %15, %16 : vector<32x8xi32>
    %cst_7 = arith.constant 0.000000e+00 : f32
    %18 = vector.broadcast %cst_7 : f32 to vector<32x8xf32>
    %19 = arith.select %17, %3, %18 : vector<32x8xi1>, vector<32x8xf32>
    %cst_8 = arith.constant dense<0.000000e+00> : vector<32xf32>
    %20 = vector.multi_reduction <add>, %19, %cst_8 [1] : vector<32x8xf32> to vector<32xf32>
    %21 = vector.shape_cast %20 : vector<32xf32> to vector<32x1xf32>
    %cst_9 = arith.constant 0.000000e+00 : f32
    %22 = vector.shape_cast %5 : vector<1x8xf32> to vector<1x8xf32>
    %23 = vector.broadcast %22 : vector<1x8xf32> to vector<32x8xf32>
    %24 = vector.broadcast %cst_9 : f32 to vector<32x8xf32>
    %25 = arith.select %17, %23, %24 : vector<32x8xi1>, vector<32x8xf32>
    %cst_10 = arith.constant dense<0.000000e+00> : vector<32xf32>
    %26 = vector.multi_reduction <add>, %25, %cst_10 [1] : vector<32x8xf32> to vector<32xf32>
    %27 = vector.shape_cast %26 : vector<32xf32> to vector<32x1xf32>
    %c32_i32 = arith.constant 32 : i32
    %28 = arith.muli %arg0, %c32_i32 : i32
    %29 = tpu.iota {dimensions = array<i32: 0>} : vector<32x1xi32>
    %30 = vector.broadcast %28 : i32 to vector<32x1xi32>
    %31 = arith.addi %30, %29 : vector<32x1xi32>
    %c32_i32_11 = arith.constant 32 : i32
    %32 = vector.broadcast %c32_i32_11 : i32 to vector<32x1xi32>
    %33 = arith.cmpi slt, %31, %32 : vector<32x1xi32>
    %c0_12 = arith.constant 0 : index
    %c0_13 = arith.constant 0 : index
    %34 = vector.load %arg5[%c0_12, %c0_13] : memref<32x1xf32, #tpu.memory_space<vmem>>, vector<32x1xf32>
    %35 = arith.subf %14, %21 : vector<32x1xf32>
    %36 = arith.mulf %27, %35 : vector<32x1xf32>
    %cst_14 = arith.constant 0.000000e+00 : f32
    %37 = vector.broadcast %cst_14 : f32 to vector<32x1xf32>
    %38 = arith.select %33, %36, %37 : vector<32x1xi1>, vector<32x1xf32>
    %39 = arith.addf %34, %38 : vector<32x1xf32>
    %c0_15 = arith.constant 0 : index
    %c0_16 = arith.constant 0 : index
    %40 = vector.load %arg5[%c0_15, %c0_16] : memref<32x1xf32, #tpu.memory_space<vmem>>, vector<32x1xf32>
    tpu.vector_store %arg5[%c0_15, %c0_16], %39 {strides = array<i32>} : memref<32x1xf32, #tpu.memory_space<vmem>>, vector<32x1xf32>,
    %c0_17 = arith.constant 0 : index
    %c0_18 = arith.constant 0 : index
    %41 = vector.load %arg6[%c0_17, %c0_18] : memref<32x1xf32, #tpu.memory_space<vmem>>, vector<32x1xf32>
    %cst_19 = arith.constant 0.000000e+00 : f32
    %42 = vector.broadcast %cst_19 : f32 to vector<32x1xf32>
    %43 = arith.select %33, %27, %42 : vector<32x1xi1>, vector<32x1xf32>
    %44 = arith.addf %41, %43 : vector<32x1xf32>
    %c0_20 = arith.constant 0 : index
    %c0_21 = arith.constant 0 : index
    %45 = vector.load %arg6[%c0_20, %c0_21] : memref<32x1xf32, #tpu.memory_space<vmem>>, vector<32x1xf32>
    tpu.vector_store %arg6[%c0_20, %c0_21], %44 {strides = array<i32>} : memref<32x1xf32, #tpu.memory_space<vmem>>, vector<32x1xf32>,
    %c0_i32_22 = arith.constant 0 : i32
    %46 = arith.cmpi eq, %arg0, %c0_i32_22 : i32
    %47 = arith.extui %46 : i1 to i32
    %c0_i32_23 = arith.constant 0 : i32
    %48 = arith.cmpi ne, %47, %c0_i32_23 : i32
    scf.if %48 {
      %c0_24 = arith.constant 0 : index
      %c0_25 = arith.constant 0 : index
      %49 = vector.load %arg5[%c0_24, %c0_25] : memref<32x1xf32, #tpu.memory_space<vmem>>, vector<32x1xf32>
      %cst_26 = arith.constant dense<0.000000e+00> : vector<1xf32>
      %50 = vector.multi_reduction <add>, %49, %cst_26 [0] : vector<32x1xf32> to vector<1xf32>
      %51 = vector.shape_cast %50 : vector<1xf32> to vector<1x1xf32>
      %c0_27 = arith.constant 0 : index
      %c0_28 = arith.constant 0 : index
      %52 = vector.load %arg6[%c0_27, %c0_28] : memref<32x1xf32, #tpu.memory_space<vmem>>, vector<32x1xf32>
      %cst_29 = arith.constant dense<0.000000e+00> : vector<1xf32>
      %53 = vector.multi_reduction <add>, %52, %cst_29 [0] : vector<32x1xf32> to vector<1xf32>
      %54 = vector.shape_cast %53 : vector<1xf32> to vector<1x1xf32>
      %55 = arith.divf %51, %54 : vector<1x1xf32>
      %c0_30 = arith.constant 0 : index
      %c0_31 = arith.constant 0 : index
      %56 = vector.load %arg4[%c0_30, %c0_31] : memref<1x1xf32, #tpu.memory_space<vmem>>, vector<1x1xf32>
      tpu.vector_store %arg4[%c0_30, %c0_31], %55 {strides = array<i32>} : memref<1x1xf32, #tpu.memory_space<vmem>>, vector<1x1xf32>,
    } else {
    }
    return
  }
  func.func @transform_0(%arg0: i32) -> (i32, i32) {
    %c0_i32 = arith.constant 0 : i32
    %c0_i32_0 = arith.constant 0 : i32
    return %arg0, %c0_i32 : i32, i32
  }
  func.func @transform_1(%arg0: i32) -> (i32, i32) {
    %c0_i32 = arith.constant 0 : i32
    %c0_i32_0 = arith.constant 0 : i32
    return %arg0, %c0_i32 : i32, i32
  }
  func.func @transform_2(%arg0: i32) -> (i32, i32) {
    %c0_i32 = arith.constant 0 : i32
    %c0_i32_0 = arith.constant 0 : i32
    %c0_i32_1 = arith.constant 0 : i32
    return %c0_i32, %c0_i32_0 : i32, i32
  }
  func.func @transform_3(%arg0: i32) -> (i32, i32) {
    %c0_i32 = arith.constant 0 : i32
    %c0_i32_0 = arith.constant 0 : i32
    %c0_i32_1 = arith.constant 0 : i32
    return %c0_i32, %c0_i32_0 : i32, i32
  }
}

</mosaic_0001>

<bundles_post_ra>
// kernel: tpu_custom_call.1
= control target key start
LH: loop header
LB: loop body
LE: loop exit
PB: predicated region body
PF: predicated region fallthrough
CT: control target
= control target key end

     0   :  { %vm37_vm0 = vcmask 64512   ;;  %v301_v6 = vmov 0   ;;  %s445_s0 = inlined_call_operand.vmem [shape: f32[32,8], index: 0, kind: input, shape index: {}]   ;;  %s446_s1 = inlined_call_operand.vmem [shape: s32[32,1], index: 1, kind: input, shape index: {}]   ;;  %s447_s2 = inlined_call_operand.vmem [shape: f32[1,8], index: 2, kind: input, shape index: {}]   ;;  %s448_s3 = inlined_call_operand.hbm [shape: f32[1,1], index: 3, kind: output, shape index: {}]  }
   0x1   :  { %v327_v0 = vld [vmem:[%s445_s0] sm:$0xff]  ;;  %v332_v1 = vld [vmem:[%s445_s0 + $0x8] sm:$0xff]  ;;  %v337_v2 = vld [vmem:[%s445_s0 + $0x10] sm:$0xff]  ;;  %258 = vset.pattern.permute.xlu1 %v301_v6  ;;  %257 = vset.pattern.permute.xlu0 %v301_v6 }
   0x2   :  { %v38_v3 = vsel %vm37_vm0, %v327_v0, -inf  ;;  %v44_v4 = vsel %vm37_vm0, %v337_v2, -inf  ;;  %v346_v5 = vld [vmem:[%s445_s0 + $0x18] sm:$0xff] }
   0x3   :  { %39 = vmax.xlane.f32.xlu0 %v38_v3  ;;  %45 = vmax.xlane.f32.xlu1 %v44_v4 }
   0x4   :  { %8 = vsyncpa [#allocation5], 0  ;;  %v41_v7 = vsel %vm37_vm0, %v332_v1, -inf  ;;  %v47_v8 = vsel %vm37_vm0, %v346_v5, -inf  ;;  %v33_v9 = vld [vmem:[%s446_s1 + $0x8] sm:$0xff]  ;;  %v34_v10 = vld [vmem:[%s446_s1 + $0x10] sm:$0xff]  ;;  %v86_v23 = vlaneseq }
   0x5   :  { %v32_v11 = vld [vmem:[%s446_s1] sm:$0xff]  ;;  %v35_v12 = vld [vmem:[%s446_s1 + $0x18] sm:$0xff]  ;;  %vm19_vm4 = vcmask 7168   ;;  %v302_v45 = vmov 0.0   ;;  %vm237_vm6 = vcmask 0  }
   0x6   :  { %v87_v27 = vand.u32 127, %v86_v23  ;;  %v253_v29 = vld [vmem:[%s447_s2] ss:$0 sm:$0xff]  ;;  %24 = vst.msk [vmem:[#allocation3] sm:$0xff] %vm19_vm4, %v302_v45  ;;  %20 = vst.msk [vmem:[#allocation2] sm:$0xff] %vm19_vm4, %v302_v45  ;;  %s303_s2 = smov [#allocation4]  }
   0x7   :  { %42 = vmax.xlane.f32.xlu0 %v41_v7  ;;  %48 = vmax.xlane.f32.xlu1 %v47_v8  ;;  %21 = vst.msk [vmem:[#allocation2 + $0x8] sm:$0xff] %vm19_vm4, %v302_v45  ;;  %22 = vst.msk [vmem:[#allocation2 + $0x10] sm:$0xff] %vm19_vm4, %v302_v45  ;;  %s245_s28 = sshll.u32 %s303_s2, 4  ;;  %s246_s28 = int_to_ptr.vmem [resolvable:$true] %s245_s28 }
   0x8   :  { %23 = vst.msk [vmem:[#allocation2 + $0x18] sm:$0xff] %vm19_vm4, %v302_v45  ;;  %25 = vst.msk [vmem:[#allocation3 + $0x8] sm:$0xff] %vm19_vm4, %v302_v45  ;;  %s277_s29 = scalar_lea.vmem %s246_s28, 16  ;;  %s281_s30 = scalar_lea.vmem %s246_s28, 32 }
   0x9   :  { %26 = vst.msk [vmem:[#allocation3 + $0x10] sm:$0xff] %vm19_vm4, %v302_v45  ;;  %27 = vst.msk [vmem:[#allocation3 + $0x18] sm:$0xff] %vm19_vm4, %v302_v45  ;;  %p278_p0 = scmp.ne.s32.totalorder %s246_s28, %s277_s29  ;;  %p282_p1 = scmp.lt.s32.totalorder %s246_s28, %s246_s28 }
   0xa   :  { %p283_p2 = scmp.lt.s32.totalorder %s281_s30, %s277_s29 }
   0xc   :  { %p284_p3 = por %p283_p2, %p282_p1 }
   0xd   :  { %v182_v58 = vld [vmem:[#allocation3] sm:$0xff] }
   0xe   :  { %p285_p4 = pnand %p284_p3, %p278_p0 }
   0xf   :  { %v183_v6 = vld [vmem:[#allocation3 + $0x8] sm:$0xff] }
  0x10   :  { %v184_v62 = vld [vmem:[#allocation3 + $0x10] sm:$0xff] }
  0x18   :  { %92 = vperm.xlu1 %258, %v33_v9  }
  0x1c   :  { %95 = vperm.xlu1 %258, %v34_v10  }
  0x1d   :  { %89 = vperm.xlu0 %257, %v32_v11   ;;  %v157_v11 = vld [vmem:[#allocation2] sm:$0xff] }
  0x20   :  { %98 = vperm.xlu1 %258, %v35_v12  }
  0x90   :  { %v364_v13 = vpop.xlane.xlu0 %39  ;;  %v366_v14 = vpop.xlane.xlu1 %45 }
  0x91   :  { %v50_v15 = vsub.f32 %v327_v0, %v364_v13  ;;  %v52_v16 = vsub.f32 %v337_v2, %v366_v14 }
  0x93   :  { %v54_v17 = vmul.f32 1.442695, %v50_v15  ;;  %v58_v19 = vmul.f32 1.442695, %v52_v16  ;;  %v185_v16 = vld [vmem:[#allocation3 + $0x18] sm:$0xff] }
  0x94   :  { %v372_v18 = vpop.xlane.xlu0 %42  ;;  %v374_v20 = vpop.xlane.xlu1 %48 }
  0x95   :  { %259 = vpow2.f32 %v54_v17  ;;  %v51_v21 = vsub.f32 %v332_v1, %v372_v18  ;;  %v53_v22 = vsub.f32 %v346_v5, %v374_v20 }
  0x96   :  { %261 = vpow2.f32 %v58_v19 }
  0x97   :  { %v56_v24 = vmul.f32 1.442695, %v51_v21  ;;  %v60_v26 = vmul.f32 1.442695, %v53_v22 }
  0x98   :  { %v93_v25 = vpop.permute.xlu1 %92 }
  0x99   :  { %263 = vpow2.f32 %v56_v24  ;;  %vm101_vm3 = vcmp.eq.s32.totalorder %v87_v27, %v93_v25 }
  0x9a   :  { %265 = vpow2.f32 %v60_v26  ;;  %v127_v47 = vsel %vm101_vm3, %v253_v29, 0.0  ;;  %v105_v53 = vsel %vm101_vm3, %v332_v1, 0.0 }
  0x9b   :  { %v133_v49 = vsel %vm37_vm0, %v127_v47, 0.0  ;;  %v111_v54 = vsel %vm37_vm0, %v105_v53, 0.0 }
  0x9c   :  { %v90_v28 = vpop.permute.xlu0 %89  ;;  %v96_v30 = vpop.permute.xlu1 %95 }
  0x9d   :  { %vm100_vm1 = vcmp.eq.s32.totalorder %v87_v27, %v90_v28  ;;  %vm102_vm2 = vcmp.eq.s32.totalorder %v87_v27, %v96_v30 }
  0x9e   :  { %v126_v32 = vsel %vm100_vm1, %v253_v29, 0.0  ;;  %v128_v37 = vsel %vm102_vm2, %v253_v29, 0.0  ;;  %v104_v42 = vsel %vm100_vm1, %v327_v0, 0.0  ;;  %v106_v48 = vsel %vm102_vm2, %v337_v2, 0.0 }
  0x9f   :  { %v260_v31 = vpop.eup %259  ;;  %v130_v35 = vsel %vm37_vm0, %v126_v32, 0.0  ;;  %v136_v39 = vsel %vm37_vm0, %v128_v37, 0.0  ;;  %v108_v46 = vsel %vm37_vm0, %v104_v42, 0.0  ;;  %v114_v50 = vsel %vm37_vm0, %v106_v48, 0.0  ;;  %v159_v32 = vld [vmem:[#allocation2 + $0x10] sm:$0xff] }
  0xa0   :  { %v62_v33 = vsel %vm37_vm0, %v260_v31, 0.0  ;;  %v262_v34 = vpop.eup %261  ;;  %v99_v44 = vpop.permute.xlu1 %98 }
  0xa1   :  { %63 = vadd.xlane.f32.xlu1 %v62_v33  ;;  %v68_v40 = vsel %vm37_vm0, %v262_v34, 0.0  ;;  %vm103_vm5 = vcmp.eq.s32.totalorder %v87_v27, %v99_v44 }
  0xa2   :  { %v129_v51 = vsel %vm103_vm5, %v253_v29, 0.0  ;;  %v107_v55 = vsel %vm103_vm5, %v346_v5, 0.0 }
  0xa3   :  { %v264_v36 = vpop.eup %263  ;;  %v139_v52 = vsel %vm37_vm0, %v129_v51, 0.0  ;;  %v117_v56 = vsel %vm37_vm0, %v107_v55, 0.0 }
  0xa4   :  { %v65_v38 = vsel %vm37_vm0, %v264_v36, 0.0  ;;  %v266_v41 = vpop.eup %265 }
  0xa5   :  { %66 = vadd.xlane.f32.xlu0 %v65_v38  ;;  %131 = vadd.xlane.f32.xlu1 %v130_v35  ;;  %v71_v43 = vsel %vm37_vm0, %v266_v41, 0.0  ;;  %v158_v35 = vld [vmem:[#allocation2 + $0x8] sm:$0xff] }
  0xa9   :  { %137 = vadd.xlane.f32.xlu0 %v136_v39  ;;  %69 = vadd.xlane.f32.xlu1 %v68_v40 }
  0xad   :  { %72 = vadd.xlane.f32.xlu1 %v71_v43  ;;  %109 = vadd.xlane.f32.xlu0 %v108_v46  ;;  %v160_v46 = vld [vmem:[#allocation2 + $0x18] sm:$0xff] }
  0xb1   :  { %134 = vadd.xlane.f32.xlu1 %v133_v49  ;;  %115 = vadd.xlane.f32.xlu0 %v114_v50 }
  0xb5   :  { %140 = vadd.xlane.f32.xlu1 %v139_v52 }
  0xb9   :  { %112 = vadd.xlane.f32.xlu1 %v111_v54 }
  0xbd   :  { %118 = vadd.xlane.f32.xlu1 %v117_v56 }
 0x12e   :  { %v64_v57 = vpop.xlane.xlu1 %63 }
 0x12f   :  { %267 = vlog2.f32 %v64_v57 }
 0x132   :  { %v132_v59 = vpop.xlane.xlu1 %131  ;;  %v67_v60 = vpop.xlane.xlu0 %66 }
 0x133   :  { %v190_v61 = vadd.f32 %v182_v58, %v132_v59  ;;  %269 = vlog2.f32 %v67_v60 }
 0x135   :  { %194 = vst.msk [vmem:[#allocation3] sm:$0xff] %vm19_vm4, %v190_v61 }
 0x136   :  { %v70_v63 = vpop.xlane.xlu1 %69  ;;  %v138_v0 = vpop.xlane.xlu0 %137 }
 0x137   :  { %271 = vlog2.f32 %v70_v63  ;;  %v192_v1 = vadd.f32 %v184_v62, %v138_v0 }
 0x139   :  { %v268_v2 = vpop.eup %267  ;;  %196 = vst.msk [vmem:[#allocation3 + $0x10] sm:$0xff] %vm19_vm4, %v192_v1 }
 0x13a   :  { %v75_v3 = vmul.f32 0.6931472, %v268_v2  ;;  %v73_v4 = vpop.xlane.xlu1 %72  ;;  %v110_v7 = vpop.xlane.xlu0 %109 }
 0x13b   :  { %273 = vlog2.f32 %v73_v4 }
 0x13c   :  { %v82_v5 = vadd.f32 %v75_v3, %v364_v13  ;;  %v218_v31 = vld [vmem:[#allocation3] sm:$0xff] }
 0x13d   :  { %v270_v8 = vpop.eup %269 }
 0x13e   :  { %v161_v9 = vsub.f32 %v82_v5, %v110_v7  ;;  %v135_v10 = vpop.xlane.xlu1 %134  ;;  %v77_v19 = vmul.f32 0.6931472, %v270_v8  ;;  %v116_v26 = vpop.xlane.xlu0 %115 }
 0x13f   :  { %v191_v12 = vadd.f32 %v183_v6, %v135_v10 }
 0x140   :  { %v165_v15 = vmul.f32 %v161_v9, %v132_v59  ;;  %v83_v27 = vadd.f32 %v77_v19, %v372_v18  ;;  %v220_v38 = vld [vmem:[#allocation3 + $0x10] sm:$0xff] }
 0x141   :  { %v272_v17 = vpop.eup %271  ;;  %195 = vst.msk [vmem:[#allocation3 + $0x8] sm:$0xff] %vm19_vm4, %v191_v12  ;;  %v225_v45 = vsel %vm19_vm4, %v220_v38, 0.0 }
 0x142   :  { %v79_v21 = vmul.f32 0.6931472, %v272_v17  ;;  %v173_v22 = vadd.f32 %v165_v15, %v157_v11  ;;  %v141_v23 = vpop.xlane.xlu1 %140 }
 0x143   :  { %v193_v24 = vadd.f32 %v185_v16, %v141_v23 }
 0x144   :  { %178 = vst.msk [vmem:[#allocation2] sm:$0xff] %vm19_vm4, %v173_v22  ;;  %v84_v13 = vadd.f32 %v79_v21, %v366_v14  ;;  %v222_v14 = vsel %vm19_vm4, %v218_v31, 0.0 }
 0x145   :  { %v274_v25 = vpop.eup %273  ;;  %197 = vst.msk [vmem:[#allocation3 + $0x18] sm:$0xff] %vm19_vm4, %v193_v24 }
 0x146   :  { %v81_v28 = vmul.f32 0.6931472, %v274_v25  ;;  %v163_v29 = vsub.f32 %v84_v13, %v116_v26  ;;  %v113_v30 = vpop.xlane.xlu1 %112 }
 0x147   :  { %v162_v33 = vsub.f32 %v83_v27, %v113_v30 }
 0x148   :  { %v167_v34 = vmul.f32 %v163_v29, %v138_v0  ;;  %v85_v36 = vadd.f32 %v81_v28, %v374_v20  ;;  %v219_v37 = vld [vmem:[#allocation3 + $0x8] sm:$0xff] }
 0x149   :  { %v166_v39 = vmul.f32 %v162_v33, %v135_v10  ;;  %v223_v40 = vsel %vm19_vm4, %v219_v37, 0.0 }
 0x14a   :  { %v175_v41 = vadd.f32 %v167_v34, %v159_v32  ;;  %v119_v42 = vpop.xlane.xlu1 %118  ;;  %v224_v18 = vadd.f32 %v223_v40, %v222_v14 }
 0x14b   :  { %v174_v43 = vadd.f32 %v166_v39, %v158_v35  ;;  %v164_v44 = vsub.f32 %v85_v36, %v119_v42  ;;  %v201_v53 = vld [vmem:[#allocation2] sm:$0xff] }
 0x14c   :  { %180 = vst.msk [vmem:[#allocation2 + $0x10] sm:$0xff] %vm19_vm4, %v175_v41  ;;  %v221_v47 = vld [vmem:[#allocation3 + $0x18] sm:$0xff]  ;;  %v226_v48 = vadd.f32 %v225_v45, %v224_v18  ;;  %v205_v58 = vsel %vm19_vm4, %v201_v53, 0.0 }
 0x14d   :  { %179 = vst.msk [vmem:[#allocation2 + $0x8] sm:$0xff] %vm19_vm4, %v174_v43  ;;  %v168_v20 = vmul.f32 %v164_v44, %v141_v23  ;;  %v227_v49 = vsel %vm19_vm4, %v221_v47, 0.0 }
 0x14e   :  { %v228_v50 = vadd.f32 %v227_v49, %v226_v48 }
 0x14f   :  { %v176_v51 = vadd.f32 %v168_v20, %v160_v46 }
 0x150   :  { %v229_v52 = vrot.slane %v228_v50, 4 }
 0x151   :  { %181 = vst.msk [vmem:[#allocation2 + $0x18] sm:$0xff] %vm19_vm4, %v176_v51 }
 0x152   :  { %v230_v54 = vadd.f32 %v229_v52, %v228_v50 }
 0x153   :  { %v203_v56 = vld [vmem:[#allocation2 + $0x10] sm:$0xff] }
 0x154   :  { %v202_v55 = vld [vmem:[#allocation2 + $0x8] sm:$0xff]  ;;  %v231_v57 = vrot.slane %v230_v54, 2  ;;  %v208_v62 = vsel %vm19_vm4, %v203_v56, 0.0 }
 0x155   :  { %v206_v59 = vsel %vm19_vm4, %v202_v55, 0.0 }
 0x156   :  { %v207_v60 = vadd.f32 %v206_v59, %v205_v58  ;;  %v232_v61 = vadd.f32 %v231_v57, %v230_v54 }
 0x158   :  { %v204_v63 = vld [vmem:[#allocation2 + $0x18] sm:$0xff]  ;;  %v209_v0 = vadd.f32 %v208_v62, %v207_v60  ;;  %v233_v1 = vrot.slane %v232_v61, 1 }
 0x159   :  { %v210_v2 = vsel %vm19_vm4, %v204_v63, 0.0 }
 0x15a   :  { %v211_v3 = vadd.f32 %v210_v2, %v209_v0  ;;  %v234_v4 = vadd.f32 %v233_v1, %v232_v61 }
 0x15c   :  { %v212_v5 = vrot.slane %v211_v3, 4  ;;  %275 = vrcp.f32 %v234_v4 }
 0x15e   :  { %v213_v6 = vadd.f32 %v212_v5, %v211_v3 }
 0x160   :  { %v214_v7 = vrot.slane %v213_v6, 2 }
 0x162   :  { %v215_v8 = vadd.f32 %v214_v7, %v213_v6 }
 0x164   :  { %v216_v9 = vrot.slane %v215_v8, 1 }
 0x166   :  { %v276_v10 = vpop.eup %275  ;;  %v217_v11 = vadd.f32 %v216_v9, %v215_v8 }
 0x168   :  { %v236_v12 = vmul.f32 %v276_v10, %v217_v11 }
 0x16a   :  { %238 = vst.msk [vmem:[#allocation4] sm:$0x1] %vm237_vm6, %v236_v12 }
 0x16b   :  { %288 = shalt.err (!%p285_p4)
}
 0x16c   :  { %s289_s6 = scalar_lea.hbm %s448_s3, 16 }
 0x16d   :  { %p290_p5 = scmp.ne.s32.totalorder %s448_s3, %s289_s6  ;;  %p293_p6 = scmp.lt.u32.totalorder %s289_s6, %s448_s3 }
 0x16f   :  { %p295_p7 = pnand %p293_p6, %p290_p5 }
 0x171   :  { %298 = shalt.err (!%p295_p7)
}
 0x172   :  { %248 = dma.vmem_to_hbm [thread:$0]  %s246_s28, 16, %s448_s3, [#allocation5]  }
 0x173   :  { %299 = dma.done.wait [#allocation5], 16  }
 0x174   :  { %300 = vsyncadd [#allocation5], 4294967280 }
 0x175   :  { %252 = vsyncpa [#allocation5], 1 }

</bundles_post_ra>
